<compile_context>
chip_gen: v7x
topology: tpu7x:2x2x1
jax: 0.10.0
libtpu: 0.0.40
codegen_flags: <defaults>
</compile_context>

<pallas_src>
import functools

import jax
import jax.numpy as jnp
from jax.experimental import pallas as pl
from jax.experimental.pallas import tpu as pltpu


# ---------------------------------------------------------------------------
# Fused single-pass kernel: whole (C, HW) image per batch resident in VMEM.
# Channels on sublanes, spatial on lanes.
# ---------------------------------------------------------------------------
def _cca_fused_kernel(x_ref, w1_ref, b1_ref, w2_ref, b2_ref, o_ref, *, inv_hw):
    x = x_ref[...]                                            # (C, HW)
    s = jnp.sum(x, axis=-1, keepdims=True)                    # (C, 1)
    sq = jnp.sum(x * x, axis=-1, keepdims=True)               # (C, 1)
    mean = s * inv_hw
    var = jnp.maximum(sq * inv_hw - mean * mean, 0.0)         # clamp (cancellation)
    y = jnp.sqrt(var) + mean                                  # std + mean, (C, 1)

    # squeeze-excite MLP in column-vector form: (Cr,C)@(C,1) then (C,Cr)@(Cr,1)
    h = jnp.dot(w1_ref[...], y, preferred_element_type=jnp.float32) + b1_ref[...]
    h = jnp.maximum(h, 0.0)
    sc = jnp.dot(w2_ref[...], h, preferred_element_type=jnp.float32) + b2_ref[...]
    sc = jax.nn.sigmoid(sc)                                   # (C, 1)

    o_ref[...] = x * sc                                       # lane-dense store


# ---------------------------------------------------------------------------
# Two-pass tiled path (large HW): pass 1 = stats + per-batch MLP (last tile),
# pass 2 = broadcast-multiply apply.
# ---------------------------------------------------------------------------
def _cca_stats_kernel(x_ref, w1_ref, b1_ref, w2_ref, b2_ref, s_ref,
                      acc_sum, acc_sq, *, inv_hw):
    t = pl.program_id(1)

    @pl.when(t == 0)
    def _():
        acc_sum[...] = jnp.zeros_like(acc_sum)
        acc_sq[...] = jnp.zeros_like(acc_sq)

    x = x_ref[...]                                            # (C, thw)
    acc_sum[...] += jnp.sum(x, axis=-1, keepdims=True)
    acc_sq[...] += jnp.sum(x * x, axis=-1, keepdims=True)

    @pl.when(t == pl.num_programs(1) - 1)
    def _():
        mean = acc_sum[...] * inv_hw
        var = jnp.maximum(acc_sq[...] * inv_hw - mean * mean, 0.0)
        y = jnp.sqrt(var) + mean                              # (C, 1)
        h = jnp.dot(w1_ref[...], y, preferred_element_type=jnp.float32) + b1_ref[...]
        h = jnp.maximum(h, 0.0)
        sc = jnp.dot(w2_ref[...], h, preferred_element_type=jnp.float32) + b2_ref[...]
        s_ref[...] = jax.nn.sigmoid(sc)                       # (C, 1) per batch


def _cca_apply_kernel(x_ref, s_ref, o_ref):
    o_ref[...] = x_ref[...] * s_ref[...]                      # (C,thw) * (C,1)


def _pick_hw_tile(hw, c, itemsize, budget_bytes):
    """Largest tile t dividing hw with t % 128 == 0 (or t == hw) within budget."""
    if hw % 128 != 0 or c * hw * itemsize <= budget_bytes:
        return hw
    best = 128
    t = 128
    while t <= hw:
        if hw % t == 0 and c * t * itemsize <= budget_bytes:
            best = t
        t += 128
    return best


def cca_wn(x_nchw, w1, b1, w2, b2, *, block_budget_bytes=4 << 20,
           force_two_pass=False):
    """x_nchw: (B,C,H,W) f32. w1: (Cr,C), b1: (Cr,), w2: (C,Cr), b2: (C,)."""
    B, C, H, W = x_nchw.shape
    Cr = w1.shape[0]
    HW = H * W

    x3 = x_nchw.reshape(B, C, HW)              # pure reshape — no transposes
    w1f = w1.astype(jnp.float32)
    w2f = w2.astype(jnp.float32)
    b1c = b1.reshape(Cr, 1).astype(jnp.float32)
    b2c = b2.reshape(C, 1).astype(jnp.float32)
    inv_hw = 1.0 / float(HW)
    itemsize = jnp.dtype(x3.dtype).itemsize

    fused_ok = (C * HW * itemsize <= block_budget_bytes) and not force_two_pass

    if fused_ok:
        out3 = pl.pallas_call(
            functools.partial(_cca_fused_kernel, inv_hw=inv_hw),
            out_shape=jax.ShapeDtypeStruct((B, C, HW), jnp.float32),
            grid_spec=pltpu.PrefetchScalarGridSpec(
                num_scalar_prefetch=0,
                grid=(B,),
                in_specs=[
                    pl.BlockSpec((None, C, HW), lambda b: (b, 0, 0)),
                    pl.BlockSpec((Cr, C), lambda b: (0, 0)),
                    pl.BlockSpec((Cr, 1), lambda b: (0, 0)),
                    pl.BlockSpec((C, Cr), lambda b: (0, 0)),
                    pl.BlockSpec((C, 1), lambda b: (0, 0)),
                ],
                out_specs=pl.BlockSpec((None, C, HW), lambda b: (b, 0, 0)),
            ),
            compiler_params=pltpu.CompilerParams(
                dimension_semantics=("parallel",)),
        )(x3, w1f, b1c, w2f, b2c)
        return out3.reshape(B, C, H, W)

    # ---------------- two-pass tiled path ----------------
    thw = _pick_hw_tile(HW, C, itemsize, block_budget_bytes)
    n_hw = HW // thw

    scale = pl.pallas_call(
        functools.partial(_cca_stats_kernel, inv_hw=inv_hw),
        out_shape=jax.ShapeDtypeStruct((B, C, 1), jnp.float32),
        grid_spec=pltpu.PrefetchScalarGridSpec(
            num_scalar_prefetch=0,
            grid=(B, n_hw),
            in_specs=[
                pl.BlockSpec((None, C, thw), lambda b, t: (b, 0, t)),
                pl.BlockSpec((Cr, C), lambda b, t: (0, 0)),
                pl.BlockSpec((Cr, 1), lambda b, t: (0, 0)),
                pl.BlockSpec((C, Cr), lambda b, t: (0, 0)),
                pl.BlockSpec((C, 1), lambda b, t: (0, 0)),
            ],
            out_specs=pl.BlockSpec((None, C, 1), lambda b, t: (b, 0, 0)),
            scratch_shapes=[pltpu.VMEM((C, 1), jnp.float32),
                            pltpu.VMEM((C, 1), jnp.float32)],
        ),
        compiler_params=pltpu.CompilerParams(
            dimension_semantics=("parallel", "arbitrary")),
    )(x3, w1f, b1c, w2f, b2c)

    out3 = pl.pallas_call(
        _cca_apply_kernel,
        out_shape=jax.ShapeDtypeStruct((B, C, HW), jnp.float32),
        grid_spec=pltpu.PrefetchScalarGridSpec(
            num_scalar_prefetch=0,
            grid=(B, n_hw),
            in_specs=[
                pl.BlockSpec((None, C, thw), lambda b, t: (b, 0, t)),
                pl.BlockSpec((None, C, 1), lambda b, t: (b, 0, 0)),
            ],
            out_specs=pl.BlockSpec((None, C, thw), lambda b, t: (b, 0, t)),
        ),
        compiler_params=pltpu.CompilerParams(
            dimension_semantics=("parallel", "parallel")),
    )(x3, scale)
    return out3.reshape(B, C, H, W)


def cca_reference(x, w1, b1, w2, b2):
    """Pure-JAX reference mirroring the PyTorch forward (NCHW)."""
    mean = jnp.mean(x, axis=(2, 3), keepdims=True)
    var = jnp.mean((x - mean) ** 2, axis=(2, 3), keepdims=True)
    y = jnp.sqrt(var) + mean                            # contrast + avg_pool
    y = y[:, :, 0, 0]                                   # (B, C)
    y = jnp.maximum(y @ w1.T + b1, 0.0)                 # (B, Cr)
    y = jax.nn.sigmoid(y @ w2.T + b2)                   # (B, C)
    return x * y[:, :, None, None]


if __name__ == "__main__":
    # Small shapes consistent with the module (reduction=16 => C >= 16).
    B, C, H, W = 2, 32, 16, 16
    reduction = 16
    Cr = C // reduction

    key = jax.random.PRNGKey(0)
    kx, k1, k2, k3, k4 = jax.random.split(key, 5)
    x = jax.random.normal(kx, (B, C, H, W), dtype=jnp.float32)

    # Deterministic synthetic parameters (weight-norm wrapper is just a
    # reparameterization; its effective weight is used directly here).
    w1 = jax.random.normal(k1, (Cr, C), dtype=jnp.float32) * 0.1   # 1x1: C -> C/r
    b1 = jax.random.normal(k2, (Cr,), dtype=jnp.float32) * 0.1
    w2 = jax.random.normal(k3, (C, Cr), dtype=jnp.float32) * 0.1   # 1x1: C/r -> C
    b2 = jax.random.normal(k4, (C,), dtype=jnp.float32) * 0.1

    ref = cca_reference(x, w1, b1, w2, b2)

    # Fused single-pass path (default for small problems).
    out_fused = jax.block_until_ready(cca_wn(x, w1, b1, w2, b2))
    assert out_fused.shape == (B, C, H, W)
    assert jnp.allclose(out_fused, ref, atol=1e-5, rtol=1e-5), "fused path mismatch"

    # Also exercise the tiled two-pass path (forces 128-wide HW tiles).
    out_tiled = jax.block_until_ready(
        cca_wn(x, w1, b1, w2, b2,
               block_budget_bytes=C * 128 * 4, force_two_pass=True))
    assert jnp.allclose(out_tiled, ref, atol=1e-5, rtol=1e-5), "tiled path mismatch"

    print("KERNEL_OK")
</pallas_src>

<mosaic_0001>
module attributes {stable_mosaic.version = 11 : i64} {
  func.func @_cca_fused_kernel(%arg0: i32, %arg1: memref<1x32x256xf32, #tpu.memory_space<vmem>>, %arg2: memref<2x32xf32, #tpu.memory_space<vmem>>, %arg3: memref<2x1xf32, #tpu.memory_space<vmem>>, %arg4: memref<32x2xf32, #tpu.memory_space<vmem>>, %arg5: memref<32x1xf32, #tpu.memory_space<vmem>>, %arg6: memref<1x32x256xf32, #tpu.memory_space<vmem>>) attributes {dimension_semantics = [#tpu.dimension_semantics<parallel>], iteration_bounds = array<i64: 2>, scalar_prefetch = 0 : i64, scratch_operands = 0 : i64, tpu.core_type = #tpu.core_type<tc>, window_params = [{transform_indices = @transform_0, window_bounds = array<i64: 1, 32, 256>}, {pipeline_mode = #tpu.pipeline_mode<synchronous>, transform_indices = @transform_1, window_bounds = array<i64: 2, 32>}, {pipeline_mode = #tpu.pipeline_mode<synchronous>, transform_indices = @transform_2, window_bounds = array<i64: 2, 1>}, {pipeline_mode = #tpu.pipeline_mode<synchronous>, transform_indices = @transform_3, window_bounds = array<i64: 32, 2>}, {pipeline_mode = #tpu.pipeline_mode<synchronous>, transform_indices = @transform_4, window_bounds = array<i64: 32, 1>}, {transform_indices = @transform_5, window_bounds = array<i64: 1, 32, 256>}]} {
    %c0 = arith.constant 0 : index
    %c0_0 = arith.constant 0 : index
    %c0_1 = arith.constant 0 : index
    %0 = vector.load %arg1[%c0, %c0_0, %c0_1] : memref<1x32x256xf32, #tpu.memory_space<vmem>>, vector<1x32x256xf32>
    %1 = vector.shape_cast %0 : vector<1x32x256xf32> to vector<32x256xf32>
    %cst = arith.constant dense<0.000000e+00> : vector<32xf32>
    %2 = vector.multi_reduction <add>, %1, %cst [1] : vector<32x256xf32> to vector<32xf32>
    %3 = vector.shape_cast %2 : vector<32xf32> to vector<32x1xf32>
    %4 = arith.mulf %1, %1 : vector<32x256xf32>
    %cst_2 = arith.constant dense<0.000000e+00> : vector<32xf32>
    %5 = vector.multi_reduction <add>, %4, %cst_2 [1] : vector<32x256xf32> to vector<32xf32>
    %6 = vector.shape_cast %5 : vector<32xf32> to vector<32x1xf32>
    %cst_3 = arith.constant 3.906250e-03 : f32
    %7 = vector.broadcast %cst_3 : f32 to vector<32x1xf32>
    %8 = arith.mulf %3, %7 : vector<32x1xf32>
    %cst_4 = arith.constant 3.906250e-03 : f32
    %9 = vector.broadcast %cst_4 : f32 to vector<32x1xf32>
    %10 = arith.mulf %6, %9 : vector<32x1xf32>
    %11 = arith.mulf %8, %8 : vector<32x1xf32>
    %12 = arith.subf %10, %11 : vector<32x1xf32>
    %cst_5 = arith.constant 0.000000e+00 : f32
    %13 = vector.broadcast %cst_5 : f32 to vector<32x1xf32>
    %14 = arith.maximumf %12, %13 : vector<32x1xf32>
    %15 = math.sqrt %14 : vector<32x1xf32>
    %16 = arith.addf %15, %8 : vector<32x1xf32>
    %c0_6 = arith.constant 0 : index
    %c0_7 = arith.constant 0 : index
    %17 = vector.load %arg2[%c0_6, %c0_7] : memref<2x32xf32, #tpu.memory_space<vmem>>, vector<2x32xf32>
    %cst_8 = arith.constant dense<0.000000e+00> : vector<2x1xf32>
    %18 = tpu.matmul %17, %16, %cst_8 {dimension_numbers = #tpu.dot_dimension_numbers<[1], [0], [0], [1], [0, 0, 1, 1], [], []>} : vector<2x32xf32>, vector<32x1xf32>, vector<2x1xf32> -> vector<2x1xf32>
    %c0_9 = arith.constant 0 : index
    %c0_10 = arith.constant 0 : index
    %19 = vector.load %arg3[%c0_9, %c0_10] : memref<2x1xf32, #tpu.memory_space<vmem>>, vector<2x1xf32>
    %20 = arith.addf %18, %19 : vector<2x1xf32>
    %cst_11 = arith.constant 0.000000e+00 : f32
    %21 = vector.broadcast %cst_11 : f32 to vector<2x1xf32>
    %22 = arith.maximumf %20, %21 : vector<2x1xf32>
    %c0_12 = arith.constant 0 : index
    %c0_13 = arith.constant 0 : index
    %23 = vector.load %arg4[%c0_12, %c0_13] : memref<32x2xf32, #tpu.memory_space<vmem>>, vector<32x2xf32>
    %cst_14 = arith.constant dense<0.000000e+00> : vector<32x1xf32>
    %24 = tpu.matmul %23, %22, %cst_14 {dimension_numbers = #tpu.dot_dimension_numbers<[1], [0], [0], [1], [0, 0, 1, 1], [], []>} : vector<32x2xf32>, vector<2x1xf32>, vector<32x1xf32> -> vector<32x1xf32>
    %c0_15 = arith.constant 0 : index
    %c0_16 = arith.constant 0 : index
    %25 = vector.load %arg5[%c0_15, %c0_16] : memref<32x1xf32, #tpu.memory_space<vmem>>, vector<32x1xf32>
    %26 = arith.addf %24, %25 : vector<32x1xf32>
    %27 = arith.negf %26 : vector<32x1xf32>
    %28 = math.exp %27 : vector<32x1xf32>
    %cst_17 = arith.constant 1.000000e+00 : f32
    %29 = vector.broadcast %cst_17 : f32 to vector<32x1xf32>
    %30 = arith.addf %29, %28 : vector<32x1xf32>
    %31 = arith.divf %29, %30 : vector<32x1xf32>
    %32 = vector.broadcast %31 : vector<32x1xf32> to vector<32x256xf32>
    %33 = arith.mulf %1, %32 : vector<32x256xf32>
    %c0_18 = arith.constant 0 : index
    %c0_19 = arith.constant 0 : index
    %c0_20 = arith.constant 0 : index
    %34 = vector.load %arg6[%c0_18, %c0_19, %c0_20] : memref<1x32x256xf32, #tpu.memory_space<vmem>>, vector<1x32x256xf32>
    %35 = vector.shape_cast %34 : vector<1x32x256xf32> to vector<32x256xf32>
    %36 = vector.shape_cast %33 : vector<32x256xf32> to vector<1x32x256xf32>
    tpu.vector_store %arg6[%c0_18, %c0_19, %c0_20], %36 {strides = array<i32>} : memref<1x32x256xf32, #tpu.memory_space<vmem>>, vector<1x32x256xf32>,
    return
  }
  func.func @transform_0(%arg0: i32) -> (i32, i32, i32) {
    %c0_i32 = arith.constant 0 : i32
    %c0_i32_0 = arith.constant 0 : i32
    %c0_i32_1 = arith.constant 0 : i32
    return %arg0, %c0_i32, %c0_i32_0 : i32, i32, i32
  }
  func.func @transform_1(%arg0: i32) -> (i32, i32) {
    %c0_i32 = arith.constant 0 : i32
    %c0_i32_0 = arith.constant 0 : i32
    %c0_i32_1 = arith.constant 0 : i32
    return %c0_i32, %c0_i32_0 : i32, i32
  }
  func.func @transform_2(%arg0: i32) -> (i32, i32) {
    %c0_i32 = arith.constant 0 : i32
    %c0_i32_0 = arith.constant 0 : i32
    %c0_i32_1 = arith.constant 0 : i32
    return %c0_i32, %c0_i32_0 : i32, i32
  }
  func.func @transform_3(%arg0: i32) -> (i32, i32) {
    %c0_i32 = arith.constant 0 : i32
    %c0_i32_0 = arith.constant 0 : i32
    %c0_i32_1 = arith.constant 0 : i32
    return %c0_i32, %c0_i32_0 : i32, i32
  }
  func.func @transform_4(%arg0: i32) -> (i32, i32) {
    %c0_i32 = arith.constant 0 : i32
    %c0_i32_0 = arith.constant 0 : i32
    %c0_i32_1 = arith.constant 0 : i32
    return %c0_i32, %c0_i32_0 : i32, i32
  }
  func.func @transform_5(%arg0: i32) -> (i32, i32, i32) {
    %c0_i32 = arith.constant 0 : i32
    %c0_i32_0 = arith.constant 0 : i32
    %c0_i32_1 = arith.constant 0 : i32
    return %arg0, %c0_i32, %c0_i32_0 : i32, i32, i32
  }
}

</mosaic_0001>

<bundles_post_ra>
// kernel: tpu_custom_call.1
= control target key start
LH: loop header
LB: loop body
LE: loop exit
PB: predicated region body
PF: predicated region fallthrough
CT: control target
= control target key end

     0   :  { %10 = vsyncpa [#allocation3], 0  ;;  %s1194_s0 = inlined_call_operand.hbm [shape: f32[2,32,256], index: 0, kind: input, shape index: {}]   ;;  %s1195_s1 = inlined_call_operand.vmem [shape: f32[2,32], index: 1, kind: input, shape index: {}]   ;;  %s1196_s2 = inlined_call_operand.vmem [shape: f32[2,1], index: 2, kind: input, shape index: {}]   ;;  %s1197_s3 = inlined_call_operand.vmem [shape: f32[32,2], index: 3, kind: input, shape index: {}]   ;;  %s1198_s4 = inlined_call_operand.vmem [shape: f32[32,1], index: 4, kind: input, shape index: {}]   ;;  %s1199_s5 = inlined_call_operand.hbm [shape: f32[2,32,256], index: 5, kind: output, shape index: {}]  }
   0x1   :  { %12 = vsyncpa [#allocation3 + $0x1], 0 }
   0x2   :  { %13 = vsyncpa [#allocation4], 0 }
   0x3   :  { %15 = vsyncpa [#allocation4 + $0x1], 0  ;;  %s948_s18 = smov 0   ;;  %s950_s19 = smov 0  }
   0x4   :  { %s952_s20 = smov 0   ;;  %s954_s21 = smov 0  }
   0x5 LB: > { %s969_s22 = sadd.s32 4294967295, %s906_s21   ;;  %s669_s23 = sadd.s32 4294967294, %s906_s21   ;;  %s906_s21 = sphi %s954_s21, %s1212_s21   ;;  %s902_s20 = sphi %s952_s20, %s1211_s20   ;;  %s898_s19 = sphi %s950_s19, %s1210_s19   ;;  %s894_s18 = sphi %s948_s18, %s1209_s18  }
   0x6   : > { %s973_s24 = sadd.s32 1, %s906_s21   ;;  %s28_s25 = sadd.s32 1, %s902_s20 }
   0x7   : > { %s25_s26 = ssub.s32 %s906_s21, %s973_s24  ;;  %p35_p0 = scmp.ne.s32.totalorder %s902_s20, %s898_s19 }
   0x8   : > { %p26_p1 = scmp.eq.s32.totalorder %s25_s26, 0  ;;  %p36_p2 = scmp.eq.s32.totalorder %s906_s21, 0 }
   0x9   : > { %p41_p3 = scmp.ne.s32.totalorder %s898_s19, %s894_s18  ;;  %p42_p4 = scmp.eq.s32.totalorder %s969_s22, 0 }
   0xa   : > { %s985_s27 = scalar_select %p26_p1, %s902_s20, %s28_s25  }
   0xb   : > { %p987_p5 = por %p36_p2, %p35_p0  ;;  %p991_p6 = por %p42_p4, %p41_p3 }
   0xc   : > { %p149_p7 = scmp.eq.s32.totalorder %s969_s22, 1  ;;  %p155_p8 = scmp.eq.s32.totalorder %s669_s23, 1 }
   0xd   : > { %p742_p10 = scmp.lt.s32.totalorder %s906_s21, 2  ;;  %s187_s7 = sand.u32 1, %s902_s20  }
   0xe   : > { %p998_p11 = por %p149_p7, %p35_p0  ;;  %p1002_p12 = por %p155_p8, %p41_p3 }
   0xf   : > { %s693_s8 = sshll.u32 %s906_s21, 10  ;;  %s672_s9 = sshll.u32 %s187_s7, 6 }
  0x10   : > { %s1203_s30 = scalar_select %p998_p11, 1, 0 }
  0x11   : > { %s1204_s6 = scalar_select %p1002_p12, 1, 0 }
  0x12   : > { %s1011_s12 = scalar_lea.hbm %s1194_s0, %s693_s8  ;;  %s191_s13 = scalar_lea.vmem [#allocation2], %s672_s9 }
  0x13   : > { %s198_s14 = sshll.u32 %s191_s13, 4  ;;  %p1015_p13 = pnand %p742_p10, %p987_p5  ;;  %s1019_s14 = int_to_ptr.vmem [resolvable:$true] %s198_s14 }
  0x14   : > { %s1021_s16 = scalar_lea.sflag [#allocation3], %s187_s7  ;;  %s810_s17 = scalar_lea.hbm %s1011_s12, 1024 }
  0x15   : > { %p811_p0 = scmp.ne.s32.totalorder %s1011_s12, %s810_s17  ;;  %p812_p1 = pneg %p1015_p13 }
  0x16   : > { %s815_s26 = scalar_lea.hbm %s1194_s0, 2048  ;;  %p816_p4 = scmp.lt.u32.totalorder %s1011_s12, %s1194_s0 }
  0x17   : > { %p813_p2 = pnand %p812_p1, %p811_p0  ;;  %p817_p5 = scmp.lt.u32.totalorder %s815_s26, %s810_s17 }
  0x18   : > { %p819_p8 = scmp.lt.u32.totalorder %s810_s17, %s1011_s12 }
  0x19   : > { %p814_p3 = pneg %p813_p2  ;;  %p818_p7 = por %p817_p5, %p816_p4 }
  0x1b   : > { %p820_p10 = por %p819_p8, %p818_p7 }
  0x1d   : > { %p821_p9 = pnand %p820_p10, %p814_p3 }
  0x1f   : > { %824 = shalt.err (!%p821_p9)
}
  0x20   : > { %s825_s7 = scalar_lea.vmem %s1019_s14, 1024  ;;  %s908_s9 = smov [#allocation2]  }
  0x21   : > { %p826_p0 = scmp.ne.s32.totalorder %s1019_s14, %s825_s7  ;;  %s830_s10 = sshll.u32 %s908_s9, 4  ;;  %s831_s10 = int_to_ptr.vmem [resolvable:$false] %s830_s10 }
  0x22   : > { %s832_s11 = scalar_lea.vmem %s831_s10, 2048  ;;  %p833_p11 = scmp.lt.s32.totalorder %s1019_s14, %s831_s10 }
  0x23   : > { %p828_p2 = pnand %p826_p0, %p812_p1  ;;  %p834_p4 = scmp.lt.s32.totalorder %s832_s11, %s825_s7 }
  0x25   : > { %p829_p12 = pneg %p828_p2  ;;  %p835_p5 = por %p834_p4, %p833_p11 }
  0x27   : > { %p836_p7 = pnand %p835_p5, %p829_p12 }
  0x29   : > { %839 = shalt.err (!%p836_p7)
}
  0x2a   : > { %s909_s13 = smov 256   ;;  %s910_s17 = smov 16  }
  0x2b   : > { %737 = dma.hbm_to_vmem [thread:$0]  (!%p1015_p13), %s1011_s12, 1024, %s1019_s14, %s1021_s16, %s909_s13, %s909_s13, %s910_s17  }
  0x2c   : > { %p675_p9 = scmp.ge.s32.totalorder %s906_s21, 1  ;;  %p206_p1 = scmp.lt.s32.totalorder %s906_s21, 3 }
  0x2e   : > { %p207_p3 = pnand %p675_p9, %p206_p1 }
  0x2f   : > { %s1052_s23 = sand.u32 (!%p207_p3), 1, %s898_s19  }
  0x30   : > { %210 = sbr.rel (%p207_p3) target bundleno = 854 (0x356), region = 40  ;;  %s676_s25 = sshll.u32 (!%p207_p3), %s1052_s23, 6 }
  0x31   : > { %s213_s26 = scalar_lea.sflag (!%p207_p3), [#allocation3], %s1052_s23  ;;  %s216_s28 = scalar_lea.vmem (!%p207_p3), [#allocation2], %s676_s25 }
  0x37   : > { %885 = dma.done.wait (%p991_p6), %s213_s26, 1024  }
  0x38   : > { %887 = vsyncadd (%p991_p6), %s213_s26, 4294966272  ;;  %v1062_v0 = vld [vmem:[%s216_s28 + $0x30] sm:$0xff]  ;;  %v1064_v1 = vld [vmem:[%s216_s28 + $0x38] sm:$0xff]  ;;  %v911_v24 = vmov 0.0|0.0   ;;  %vm912_vm0 = vmmov 0   ;;  %v913_v25 = vmov 0.0  }
  0x39   : > { %v1066_v2 = vld [vmem:[%s216_s28] sm:$0xff]  ;;  %v260_v3 = vadd.f32 %v1064_v1, %v1062_v0  ;;  %v1070_v4 = vld [vmem:[%s216_s28 + $0x8] sm:$0xff]  ;;  %v1074_v6 = vld [vmem:[%s216_s28 + $0x10] sm:$0xff]  ;;  %v269_v17 = vmul.f32 %v1062_v0, %v1062_v0  ;;  %v270_v18 = vmul.f32 %v1064_v1, %v1064_v1  ;;  %724 = vmatprep.subr.bf16.mxu0 %v911_v24  ;;  %713 = vmatprep.mubr.msk.f32.mxu0 %vm912_vm0, %v913_v25  ;;  %vm337_vm9 = vcmask 261120   ;;  %s242_s7 = scalar_lea.vmem [#allocation5], %s676_s25  ;;  %s694_s10 = sshll.u32 %s969_s22, 10 }
  0x3a   : > { %v263_v5 = vmul.f32 %v1066_v2, %v1066_v2  ;;  %v1076_v7 = vld [vmem:[%s216_s28 + $0x18] sm:$0xff]  ;;  %v251_v8 = vadd.f32 %v1070_v4, %v1066_v2  ;;  %v264_v9 = vmul.f32 %v1070_v4, %v1070_v4  ;;  %v265_v10 = vmul.f32 %v1074_v6, %v1074_v6  ;;  %v1088_v14 = vld [vmem:[%s216_s28 + $0x20] sm:$0xff]  ;;  %v1090_v15 = vld [vmem:[%s216_s28 + $0x28] sm:$0xff]  ;;  %s596_s9 = sshll.u32 %s242_s7, 4  ;;  %s1148_s13 = scalar_lea.hbm %s1199_s5, %s694_s10  ;;  %s1143_s9 = int_to_ptr.vmem [resolvable:$true] %s596_s9 }
  0x3b   : > { %261 = vadd.xlane.f32.xlu1 %v260_v3  ;;  %v266_v11 = vmul.f32 %v1076_v7, %v1076_v7  ;;  %v254_v13 = vadd.f32 %v1076_v7, %v1074_v6  ;;  %v257_v19 = vadd.f32 %v1090_v15, %v1088_v14  ;;  %v267_v20 = vmul.f32 %v1088_v14, %v1088_v14  ;;  %v335_v25 = vld [vmem:[%s1195_s1] sm:$0x3]  ;;  %s583_s22 = scalar_lea.sflag [#allocation4], %s1052_s23  ;;  %s840_s17 = scalar_lea.vmem %s1143_s9, 1024 }
  0x3c   : > { %252 = vadd.xlane.f32.xlu0 %v251_v8  ;;  %v271_v12 = vadd.f32 %v264_v9, %v263_v5  ;;  %v268_v21 = vmul.f32 %v1090_v15, %v1090_v15  ;;  %v280_v22 = vadd.f32 %v270_v18, %v269_v17  ;;  %vm420_vm10 = vcmask 15360   ;;  %p841_p6 = scmp.ne.s32.totalorder %s1143_s9, %s840_s17  ;;  %p1206_p11 = scmp.ne.s32.totalorder %s1203_s30, 0 }
  0x3d   : > { %v274_v16 = vadd.f32 %v266_v11, %v265_v10  ;;  %vm433_vm11 = vcmask 1041408   ;;  %s915_s26 = smov [#allocation5]  }
  0x3e   : > { %v277_v23 = vadd.f32 %v268_v21, %v267_v20  ;;  %p842_p12 = pnand %p841_p6, %p1206_p11  ;;  %s844_s28 = sshll.u32 %s915_s26, 4  ;;  %s845_s28 = int_to_ptr.vmem [resolvable:$false] %s844_s28 }
  0x3f   : > { %272 = vadd.xlane.f32.xlu1 %v271_v12  ;;  %s846_s29 = scalar_lea.vmem %s845_s28, 2048  ;;  %p847_p8 = scmp.lt.s32.totalorder %s1143_s9, %s845_s28 }
  0x40   : > { %255 = vadd.xlane.f32.xlu0 %v254_v13  ;;  %p843_p13 = pneg %p842_p12  ;;  %p848_p10 = scmp.lt.s32.totalorder %s846_s29, %s840_s17 }
  0x42   : > { %p849_p0 = por %p848_p10, %p847_p8 }
  0x43   : > { %275 = vadd.xlane.f32.xlu1 %v274_v16 }
  0x44   : > { %258 = vadd.xlane.f32.xlu0 %v257_v19  ;;  %p850_p2 = pnand %p849_p0, %p843_p13 }
  0x47   : > { %281 = vadd.xlane.f32.xlu1 %v280_v22 }
  0x48   : > { %278 = vadd.xlane.f32.xlu0 %v277_v23 }
  0xc8   : > { %v262_v26 = vpop.xlane.xlu1 %261 }
  0xc9   : > { %v253_v27 = vpop.xlane.xlu0 %252  ;;  %v286_v36 = vmul.f32 0.00390625, %v262_v26  ;;  %v412_v26 = vld [vmem:[%s1197_s3] sm:$0xff] }
  0xca   : > { %v283_v28 = vmul.f32 0.00390625, %v253_v27  ;;  %718 = vmatprep.mubr.msk.f32.mxu1 %vm420_vm10, %v412_v26  ;;  %v336_v27 = vld [vmem:[%s1196_s2] sm:$0x3] }
  0xcb   : > { %v294_v44 = vmul.f32 %v286_v36, %v286_v36 }
  0xcc   : > { %v273_v29 = vpop.xlane.xlu1 %272  ;;  %v291_v30 = vmul.f32 %v283_v28, %v283_v28 }
  0xcd   : > { %v287_v31 = vmul.f32 0.00390625, %v273_v29  ;;  %v256_v32 = vpop.xlane.xlu0 %255 }
  0xce   : > { %v284_v33 = vmul.f32 0.00390625, %v256_v32  ;;  %v414_v32 = vld [vmem:[%s1197_s3 + $0x10] sm:$0xff] }
  0xcf   : > { %v295_v34 = vsub.f32 %v287_v31, %v291_v30  ;;  %v413_v31 = vld [vmem:[%s1197_s3 + $0x8] sm:$0xff] }
  0xd0   : > { %v276_v35 = vpop.xlane.xlu1 %275  ;;  %v292_v38 = vmul.f32 %v284_v33, %v284_v33 }
  0xd1   : > { %v299_v37 = vmax.f32 %v295_v34, 0.0  ;;  %v288_v39 = vmul.f32 0.00390625, %v276_v35  ;;  %v259_v40 = vpop.xlane.xlu0 %258  ;;  %v914_v34 = vmov 0   ;;  %v417_v35 = vld [vmem:[%s1198_s4 + $0x8] sm:$0xff] }
  0xd2   : > { %v285_v41 = vmul.f32 0.00390625, %v259_v40  ;;  %785 = vset.pattern.permute.xlu1 %v914_v34  ;;  %784 = vset.pattern.permute.xlu0 %v914_v34 }
  0xd3   : > { %786 = vrsqrt.f32 %v299_v37  ;;  %v296_v42 = vsub.f32 %v288_v39, %v292_v38  ;;  %vm305_vm1 = vcmp.eq.f32.partialorder %v299_v37, inf  ;;  %v308_v58 = vand.u32 2147483648, %v299_v37 }
  0xd4   : > { %v282_v43 = vpop.xlane.xlu1 %281  ;;  %v293_v48 = vmul.f32 %v285_v41, %v285_v41  ;;  %vm307_vm2 = vcmp.eq.f32.partialorder %v299_v37, 0.0 }
  0xd5   : > { %v300_v45 = vmax.f32 %v296_v42, 0.0  ;;  %v290_v46 = vmul.f32 0.00390625, %v282_v43  ;;  %v279_v47 = vpop.xlane.xlu0 %278  ;;  %v418_v43 = vld [vmem:[%s1198_s4 + $0x10] sm:$0xff] }
  0xd6   : > { %v289_v49 = vmul.f32 0.00390625, %v279_v47 }
  0xd7   : > { %788 = vrsqrt.f32 %v300_v45  ;;  %v298_v50 = vsub.f32 %v290_v46, %v294_v44  ;;  %vm312_vm3 = vcmp.eq.f32.partialorder %v300_v45, inf  ;;  %v315_v61 = vand.u32 2147483648, %v300_v45 }
  0xd8   : > { %v297_v51 = vsub.f32 %v289_v49, %v293_v48  ;;  %vm314_vm4 = vcmp.eq.f32.partialorder %v300_v45, 0.0 }
  0xd9   : > { %v302_v52 = vmax.f32 %v298_v50, 0.0 }
  0xda   : > { %v301_v53 = vmax.f32 %v297_v51, 0.0 }
  0xdb   : > { %790 = vrsqrt.f32 %v302_v52  ;;  %vm326_vm5 = vcmp.eq.f32.partialorder %v302_v52, inf  ;;  %vm328_vm6 = vcmp.eq.f32.partialorder %v302_v52, 0.0  ;;  %v329_v12 = vand.u32 2147483648, %v302_v52 }
  0xdc   : > { %792 = vrsqrt.f32 %v301_v53  ;;  %vm319_vm7 = vcmp.eq.f32.partialorder %v301_v53, inf  ;;  %v322_v16 = vand.u32 2147483648, %v301_v53  ;;  %vm321_vm8 = vcmp.eq.f32.partialorder %v301_v53, 0.0 }
  0xdd   : > { %v787_v54 = vpop.eup %786 }
  0xde   : > { %v304_v55 = vmul.f32 %v787_v54, %v299_v37 }
  0xe0   : > { %v306_v56 = vsel %vm305_vm1, %v299_v37, %v304_v55 }
  0xe1   : > { %v789_v57 = vpop.eup %788  ;;  %v309_v60 = vsel %vm307_vm2, %v308_v58, %v306_v56 }
  0xe2   : > { %v311_v59 = vmul.f32 %v789_v57, %v300_v45  ;;  %v331_v8 = vadd.f32 %v309_v60, %v283_v28 }
  0xe4   : > { %v313_v62 = vsel %vm312_vm3, %v300_v45, %v311_v59 }
  0xe5   : > { %v791_v63 = vpop.eup %790  ;;  %v316_v3 = vsel %vm314_vm4, %v315_v61, %v313_v62 }
  0xe6   : > { %v793_v5 = vpop.eup %792  ;;  %v332_v9 = vadd.f32 %v316_v3, %v284_v33  ;;  %v325_v10 = vmul.f32 %v791_v63, %v302_v52  ;;  %v415_v33 = vld [vmem:[%s1197_s3 + $0x18] sm:$0xff] }
  0xe7   : > { %v318_v11 = vmul.f32 %v793_v5, %v301_v53 }
  0xe8   : > { %v725_v13 = vpack.c.bf16 %v332_v9, %v331_v8  ;;  %v327_v17 = vsel %vm326_vm5, %v302_v52, %v325_v10 }
  0xe9   : > { %v320_v18 = vsel %vm319_vm7, %v301_v53, %v318_v11  ;;  %v330_v19 = vsel %vm328_vm6, %v329_v12, %v327_v17 }
  0xea   : > { %726 = vmatpush3.bf16.msra.mxu0 %v725_v13  ;;  %v323_v20 = vsel %vm321_vm8, %v322_v16, %v320_v18  ;;  %v334_v21 = vadd.f32 %v330_v19, %v286_v36  ;;  %v416_v36 = vld [vmem:[%s1198_s4] sm:$0xff] }
  0xeb   : > { %727 = vmatprep.subr.bf16.mxu0 %v911_v24  ;;  %v333_v22 = vadd.f32 %v323_v20, %v285_v41  ;;  %v419_v41 = vld [vmem:[%s1198_s4 + $0x18] sm:$0xff] }
  0xed   : > { %v728_v23 = vpack.c.bf16 %v334_v21, %v333_v22 }
  0xef   : > { %729 = vmatpush3.bf16.msra.mxu0 %v728_v23 }
  0xf2   : > { %714 = vmatmul.mubr.msk.f32.vlgmr.msra.gmra.mrb[0].mxu0 %vm337_vm9, %v335_v25 }
 0x1c5   : > { %v407_v24 = vpop.f32.mrb[0].mxu0 }
 0x1c6   : > { %v408_v28 = vadd.f32 %v407_v24, %v336_v27  ;;  %v715_v29 = vpop.f32.mrb[1].mxu0 }
 0x1c8   : > { %v411_v30 = vmax.f32 %v408_v28, 0.0 }
 0x1ca   : > { %716 = vmatprep.subr.msk.mxu1 %vm433_vm11, %v411_v30 }
 0x1cb   : > { %717 = vmatpush3.msk.msra.mxu1 %vm433_vm11, %v411_v30 }
 0x1cc   : > { %719 = vmatmul.mubr.msk.f32.vlgmr.msra.gmra.mrb[0].mxu1 %vm420_vm10, %v413_v31 }
 0x1cd   : > { %721 = vmatprep.mubr.msk.f32.mxu1 %vm420_vm10, %v414_v32 }
 0x1d0   : > { %722 = vmatmul.mubr.msk.f32.gmra.mrb[2].mxu1 %vm420_vm10, %v415_v33 }
 0x29f   : > { %v720_v37 = vpop.f32.mrb[0].mxu1 }
 0x2a0   : > { %v509_v38 = vadd.f32 %v720_v37, %v417_v35  ;;  %v503_v39 = vpop.f32.mrb[1].mxu1 }
 0x2a1   : > { %v504_v40 = vadd.f32 %v503_v39, %v416_v36 }
 0x2a2   : > { %v685_v42 = vmul.f32 -1.442695, %v509_v38 }
 0x2a3   : > { %v684_v44 = vmul.f32 -1.442695, %v504_v40  ;;  %v723_v45 = vpop.f32.mrb[2].mxu1 }
 0x2a4   : > { %794 = vpow2.f32 %v685_v42  ;;  %v519_v46 = vadd.f32 %v723_v45, %v419_v41  ;;  %v513_v47 = vpop.f32.mrb[3].mxu1 }
 0x2a5   : > { %796 = vpow2.f32 %v684_v44  ;;  %v514_v48 = vadd.f32 %v513_v47, %v418_v43 }
 0x2a6   : > { %v687_v49 = vmul.f32 -1.442695, %v519_v46 }
 0x2a7   : > { %v686_v50 = vmul.f32 -1.442695, %v514_v48 }
 0x2a8   : > { %798 = vpow2.f32 %v687_v49 }
 0x2a9   : > { %800 = vpow2.f32 %v686_v50 }
 0x2ae   : > { %v795_v51 = vpop.eup %794 }
 0x2af   : > { %v797_v52 = vpop.eup %796  ;;  %v535_v53 = vadd.f32 1.0, %v795_v51 }
 0x2b0   : > { %v534_v54 = vadd.f32 1.0, %v797_v52 }
 0x2b1   : > { %802 = vrcp.f32 %v535_v53 }
 0x2b2   : > { %v799_v55 = vpop.eup %798  ;;  %804 = vrcp.f32 %v534_v54 }
 0x2b3   : > { %v801_v56 = vpop.eup %800  ;;  %v537_v58 = vadd.f32 1.0, %v799_v55 }
 0x2b4   : > { %v536_v57 = vadd.f32 1.0, %v801_v56 }
 0x2b6   : > { %806 = vrcp.f32 %v536_v57 }
 0x2b7   : > { %808 = vrcp.f32 %v537_v58 }
 0x2bb   : > { %v803_v59 = vpop.eup %802 }
 0x2bc   : > { %v805_v60 = vpop.eup %804  ;;  %553 = vperm.xlu1 %785, %v803_v59  }
 0x2bd   : > { %548 = vperm.xlu0 %784, %v805_v60  }
 0x2c0   : > { %v807_v61 = vpop.eup %806 }
 0x2c1   : > { %558 = vperm.xlu1 %785, %v807_v61   ;;  %v809_v62 = vpop.eup %808 }
 0x2c5   : > { %563 = vperm.xlu1 %785, %v809_v62  }
 0x33b   : > { %v554_v63 = vpop.permute.xlu1 %553 }
 0x33c   : > { %v568_v3 = vmul.f32 %v554_v63, %v1074_v6  ;;  %v569_v5 = vmul.f32 %v554_v63, %v1076_v7  ;;  %v549_v8 = vpop.permute.xlu0 %548 }
 0x33d   : > { %v566_v9 = vmul.f32 %v549_v8, %v1066_v2  ;;  %v567_v10 = vmul.f32 %v549_v8, %v1070_v4 }
 0x33e   : > { %576 = vst [vmem:[%s242_s7 + $0x10] sm:$0xff] %v568_v3  ;;  %577 = vst [vmem:[%s242_s7 + $0x18] sm:$0xff] %v569_v5 }
 0x33f   : > { %574 = vst [vmem:[%s242_s7] sm:$0xff] %v566_v9  ;;  %575 = vst [vmem:[%s242_s7 + $0x8] sm:$0xff] %v567_v10 }
 0x340   : > { %v559_v11 = vpop.permute.xlu1 %558 }
 0x341   : > { %v570_v12 = vmul.f32 %v559_v11, %v1088_v14  ;;  %v571_v6 = vmul.f32 %v559_v11, %v1090_v15 }
 0x343   : > { %578 = vst [vmem:[%s242_s7 + $0x20] sm:$0xff] %v570_v12  ;;  %579 = vst [vmem:[%s242_s7 + $0x28] sm:$0xff] %v571_v6 }
 0x344   : > { %v564_v2 = vpop.permute.xlu1 %563 }
 0x345   : > { %v572_v4 = vmul.f32 %v564_v2, %v1062_v0  ;;  %v573_v7 = vmul.f32 %v564_v2, %v1064_v1 }
 0x347   : > { %580 = vst [vmem:[%s242_s7 + $0x30] sm:$0xff] %v572_v4  ;;  %581 = vst [vmem:[%s242_s7 + $0x38] sm:$0xff] %v573_v7 }
 0x348   : > { %853 = shalt.err (!%p850_p2)
}
 0x349   : > { %s854_s12 = scalar_lea.hbm %s1148_s13, 1024  ;;  %s858_s16 = scalar_lea.hbm %s1199_s5, 2048 }
 0x34a   : > { %p855_p4 = scmp.ne.s32.totalorder %s1148_s13, %s854_s12  ;;  %p859_p9 = scmp.lt.u32.totalorder %s1148_s13, %s1199_s5 }
 0x34b   : > { %p860_p1 = scmp.lt.u32.totalorder %s858_s16, %s854_s12  ;;  %p862_p6 = scmp.lt.u32.totalorder %s854_s12, %s1148_s13 }
 0x34c   : > { %p856_p5 = pnand %p855_p4, %p1206_p11 }
 0x34d   : > { %p861_p3 = por %p860_p1, %p859_p9 }
 0x34e   : > { %p857_p7 = pneg %p856_p5 }
 0x34f   : > { %p863_p12 = por %p862_p6, %p861_p3 }
 0x351   : > { %p864_p13 = pnand %p863_p12, %p857_p7 }
 0x353   : > { %867 = shalt.err (!%p864_p13)
}
 0x354   : > { %s916_s10 = smov 256   ;;  %s917_s25 = smov 16  }
 0x355   : > { %732 = dma.vmem_to_hbm [thread:$0]  (%p1206_p11), %s1143_s9, 1024, %s1148_s13, %s583_s22, %s916_s10, %s916_s10, %s917_s25  }
 0x356 PF: > { %s611_s11 = sand.u32 1, %s894_s18   ;;  %p1207_p8 = scmp.ne.s32.totalorder %s1204_s6, 0 }
 0x357   : > { %p1208_p10 = scmp.ge.s32.totalorder %s906_s21, 2  ;;  %s612_s17 = scalar_lea.sflag [#allocation4], %s611_s11 }
 0x359   : > { %p739_p0 = pnand %p1208_p10, %p1207_p8 }
 0x35b   : > { %889 = dma.done.wait (!%p739_p0), %s612_s17, 1024  }
 0x35c   : > { %891 = vsyncadd (!%p739_p0), %s612_s17, 4294966272  ;;  %p18_p2 = scmp.ge.s32.totalorder %s973_s24, 4   ;;  %s1209_s18 = smov %s898_s19 }
 0x35d   : > { %s1210_s19 = smov %s902_s20  ;;  %s1211_s20 = smov %s985_s27 }
 0x35e   : > { %s1212_s21 = smov %s973_s24  ;;  %20 = sbr.rel (!%p18_p2) target bundleno = 5 (0x5), region = 85 }
 0x365   :  { %617 = vsyncpa [#allocation3], 1 }
 0x366   :  { %619 = vsyncpa [#allocation3 + $0x1], 1 }
 0x367   :  { %620 = vsyncpa [#allocation4], 1 }
 0x368   :  { %622 = vsyncpa [#allocation4 + $0x1], 1 }

</bundles_post_ra>
